<compile_context>
chip_gen: v7x
topology: tpu7x:2x2x1
jax: 0.10.0
libtpu: 0.0.40
codegen_flags: <defaults>
</compile_context>

<pallas_src>
import functools

import jax
import jax.numpy as jnp
from jax import lax
from jax.experimental import pallas as pl
from jax.experimental.pallas import tpu as pltpu


def _static_context_embedding_kernel(
    src_ref,    # (TILE_S, D) VMEM   (batch dim squeezed)
    v_ref,      # (B, D)      VMEM   resident precomputed static embedding
    w_ref,      # (D, D)      VMEM   pre-transposed (and pre-cast) fuse_src weight
    p_ref,      # (3, D)      VMEM   rows: b_fuse, gamma, beta (f32)
    out_ref,    # (TILE_S, D) VMEM
    *,
    approx_softmax_recip,
):
    b = pl.program_id(0)

    src = src_ref[...]
    src_f32 = src.astype(jnp.float32)

    w = w_ref[...]
    lhs = src if src.dtype == w.dtype else src.astype(w.dtype)

    # q = fuse_src(src): MXU matmul, f32 accumulation; bias add in f32.
    q = jnp.dot(lhs, w, preferred_element_type=jnp.float32) + p_ref[0:1, :]

    # key = softmax(q, -1).  Exact division by default; approximate EUP
    # reciprocal only when explicitly requested (production builds).
    q_max = jnp.max(q, axis=-1, keepdims=True)
    e = jnp.exp(q - q_max)
    denom = jnp.sum(e, axis=-1, keepdims=True)
    if approx_softmax_recip:
        key = e * pl.reciprocal(denom, approx=True)
    else:
        key = e / denom

    # fuse = key * v[b]; v is resident, one dynamic row slice per tile.
    v_row = v_ref[pl.ds(b, 1), :]                         # (1, D) f32
    fuse = key * v_row

    # LayerNorm(src + dropout(fuse)); dropout is identity in eval mode.
    x = src_f32 + fuse
    mean = jnp.mean(x, axis=-1, keepdims=True)
    xc = x - mean
    var = jnp.mean(xc * xc, axis=-1, keepdims=True)
    y = xc * lax.rsqrt(var + 1e-5) * p_ref[1:2, :] + p_ref[2:3, :]

    out_ref[...] = y.astype(out_ref.dtype)


def _sublane_multiple(itemsize):
    # Native sublane tile: 8 rows for f32, 16 for bf16, 32 for int8/fp8.
    return max(8, 32 // int(itemsize))


def _choose_tile_s(S, D, itemsize, block_budget_bytes, max_tile=512):
    """Row tile: as large as the VMEM budget allows, but capped so the S axis
    keeps multiple pipelined grid steps, rounded to the dtype sublane tile."""
    sub = _sublane_multiple(itemsize)
    # Double-buffered src + out blocks plus ~4 live f32 intermediate tiles
    # (q, e/key, x, y) that the reductions force to stay resident.
    bytes_per_row = 4 * D * itemsize + 4 * D * 4
    max_rows = max(sub, block_budget_bytes // bytes_per_row)
    tile = int(min(S, max_tile, max_rows))
    if tile >= S:
        return S                      # full-seq block (block dim == array dim)
    return max(sub, (tile // sub) * sub)


def _vmem_budgets():
    """(src/out block budget, vmem_limit_bytes) tuned per VMEM capacity."""
    try:
        vmem_bytes = pltpu.get_tpu_info().vmem_capacity_bytes
    except Exception:
        vmem_bytes = 64 * 1024 * 1024          # assume smallest (v7x per-TC)
    if vmem_bytes >= 128 * 1024 * 1024:        # v5e / v6e: plenty of headroom
        return 32 * 1024 * 1024, 96 * 1024 * 1024
    return 8 * 1024 * 1024, 48 * 1024 * 1024   # v7x (64 MiB) or unknown


def static_context_embedding(src, static_context, params, *,
                             use_bf16_matmul=False,
                             approx_softmax_recip=False):
    """src: (B, S, D), static_context: (B, Ds)."""
    B, S, D = src.shape

    # Hoisted static-context GEMV: one (B, Ds) @ (Ds, D) matmul for all batches.
    v = (static_context @ params["w_static"].T + params["b_static"]).astype(jnp.float32)  # (B, D)

    # Pre-transpose and pre-cast the fuse weight in the wrapper (no per-step
    # cast inside the kernel, half the weight DMA bytes when bf16).
    matmul_dtype = jnp.bfloat16 if use_bf16_matmul else params["w_fuse"].dtype
    w_fuse_t = params["w_fuse"].T.astype(matmul_dtype)                                     # (D, D)

    # Pack bias / gamma / beta into a single constant-index block.
    pvec = jnp.stack(
        [params["b_fuse"], params["gamma"], params["beta"]], axis=0
    ).astype(jnp.float32)                                                                  # (3, D)

    block_budget, vmem_limit = _vmem_budgets()
    tile_s = _choose_tile_s(S, D, jnp.dtype(src.dtype).itemsize, block_budget)
    grid = (B, pl.cdiv(S, tile_s))

    kernel = functools.partial(
        _static_context_embedding_kernel,
        approx_softmax_recip=approx_softmax_recip,
    )

    grid_spec = pltpu.PrefetchScalarGridSpec(
        num_scalar_prefetch=0,
        grid=grid,
        in_specs=[
            pl.BlockSpec((pl.Squeezed(), tile_s, D), lambda b, s: (b, s, 0)),  # src
            pl.BlockSpec((B, D), lambda b, s: (0, 0)),                         # v (resident)
            pl.BlockSpec((D, D), lambda b, s: (0, 0)),                         # w_fuse^T (resident)
            pl.BlockSpec((3, D), lambda b, s: (0, 0)),                         # b_fuse/gamma/beta
        ],
        out_specs=pl.BlockSpec((pl.Squeezed(), tile_s, D), lambda b, s: (b, s, 0)),
    )

    return pl.pallas_call(
        kernel,
        out_shape=jax.ShapeDtypeStruct((B, S, D), src.dtype),
        grid_spec=grid_spec,
        compiler_params=pltpu.CompilerParams(
            dimension_semantics=("parallel", "parallel"),
            vmem_limit_bytes=vmem_limit,
        ),
    )(src, v, w_fuse_t, pvec)


def _reference(src, static_context, params):
    q = src @ params["w_fuse"].T + params["b_fuse"]
    v = static_context @ params["w_static"].T + params["b_static"]
    key = jax.nn.softmax(q, axis=-1)
    fuse = key * v[:, None, :]
    x = src + fuse
    mean = x.mean(-1, keepdims=True)
    var = ((x - mean) ** 2).mean(-1, keepdims=True)
    return (x - mean) / jnp.sqrt(var + 1e-5) * params["gamma"] + params["beta"]


if __name__ == "__main__":
    # Small shapes: batch=2, seq=8, dim_val=dim_w=32, dim_static=8
    B, S, D, Ds = 2, 8, 32, 8

    key0 = jax.random.PRNGKey(0)
    ks = jax.random.split(key0, 6)

    src = jax.random.normal(ks[0], (B, S, D), dtype=jnp.float32)
    static_context = jax.random.normal(ks[1], (B, Ds), dtype=jnp.float32)

    params = {
        "w_fuse": 0.1 * jax.random.normal(ks[2], (D, D), dtype=jnp.float32),
        "b_fuse": 0.1 * jax.random.normal(ks[3], (D,), dtype=jnp.float32),
        "w_static": 0.1 * jax.random.normal(ks[4], (D, Ds), dtype=jnp.float32),
        "b_static": 0.1 * jax.random.normal(ks[5], (D,), dtype=jnp.float32),
        "gamma": jnp.ones((D,), dtype=jnp.float32),
        "beta": jnp.zeros((D,), dtype=jnp.float32),
    }

    # Validation build: f32 matmul, exact softmax reciprocal.
    out = static_context_embedding(src, static_context, params,
                                   use_bf16_matmul=False,
                                   approx_softmax_recip=False)
    out = jax.block_until_ready(out)

    ref = _reference(src, static_context, params)
    assert out.shape == (B, S, D)
    assert jnp.allclose(out, ref, atol=1e-4, rtol=1e-4), "mismatch vs reference"

    # TODO(synk): training-mode dropout (random mask via pltpu.prng_seed /
    # prng_random_bits) is not implemented; the kernel matches eval mode only.
    print("KERNEL_OK")
</pallas_src>

<mosaic_0001>
module attributes {stable_mosaic.version = 11 : i64} {
  func.func @_static_context_embedding_kernel(%arg0: i32, %arg1: i32, %arg2: memref<1x8x32xf32, #tpu.memory_space<vmem>>, %arg3: memref<2x32xf32, #tpu.memory_space<vmem>>, %arg4: memref<32x32xf32, #tpu.memory_space<vmem>>, %arg5: memref<3x32xf32, #tpu.memory_space<vmem>>, %arg6: memref<1x8x32xf32, #tpu.memory_space<vmem>>) attributes {dimension_semantics = [#tpu.dimension_semantics<parallel>, #tpu.dimension_semantics<parallel>], iteration_bounds = array<i64: 2, 1>, scalar_prefetch = 0 : i64, scratch_operands = 0 : i64, tpu.core_type = #tpu.core_type<tc>, window_params = [{transform_indices = @transform_0, window_bounds = array<i64: 1, 8, 32>}, {pipeline_mode = #tpu.pipeline_mode<synchronous>, transform_indices = @transform_1, window_bounds = array<i64: 2, 32>}, {pipeline_mode = #tpu.pipeline_mode<synchronous>, transform_indices = @transform_2, window_bounds = array<i64: 32, 32>}, {pipeline_mode = #tpu.pipeline_mode<synchronous>, transform_indices = @transform_3, window_bounds = array<i64: 3, 32>}, {transform_indices = @transform_4, window_bounds = array<i64: 1, 8, 32>}]} {
    %c0 = arith.constant 0 : index
    %c0_0 = arith.constant 0 : index
    %c0_1 = arith.constant 0 : index
    %0 = vector.load %arg2[%c0, %c0_0, %c0_1] : memref<1x8x32xf32, #tpu.memory_space<vmem>>, vector<1x8x32xf32>
    %1 = vector.shape_cast %0 : vector<1x8x32xf32> to vector<8x32xf32>
    %c0_2 = arith.constant 0 : index
    %c0_3 = arith.constant 0 : index
    %2 = vector.load %arg4[%c0_2, %c0_3] : memref<32x32xf32, #tpu.memory_space<vmem>>, vector<32x32xf32>
    %cst = arith.constant dense<0.000000e+00> : vector<8x32xf32>
    %3 = tpu.matmul %1, %2, %cst {dimension_numbers = #tpu.dot_dimension_numbers<[1], [0], [0], [1], [0, 0, 1, 1], [], []>} : vector<8x32xf32>, vector<32x32xf32>, vector<8x32xf32> -> vector<8x32xf32>
    %c0_4 = arith.constant 0 : index
    %c0_5 = arith.constant 0 : index
    %4 = vector.load %arg5[%c0_4, %c0_5] : memref<3x32xf32, #tpu.memory_space<vmem>>, vector<1x32xf32>
    %5 = vector.broadcast %4 : vector<1x32xf32> to vector<8x32xf32>
    %6 = arith.addf %3, %5 : vector<8x32xf32>
    %cst_6 = arith.constant dense<0xFF800000> : vector<8xf32>
    %7 = vector.multi_reduction <maximumf>, %6, %cst_6 [1] : vector<8x32xf32> to vector<8xf32>
    %8 = vector.shape_cast %7 : vector<8xf32> to vector<8x1xf32>
    %9 = vector.broadcast %8 : vector<8x1xf32> to vector<8x32xf32>
    %10 = arith.subf %6, %9 : vector<8x32xf32>
    %11 = math.exp %10 : vector<8x32xf32>
    %cst_7 = arith.constant dense<0.000000e+00> : vector<8xf32>
    %12 = vector.multi_reduction <add>, %11, %cst_7 [1] : vector<8x32xf32> to vector<8xf32>
    %13 = vector.shape_cast %12 : vector<8xf32> to vector<8x1xf32>
    %14 = vector.broadcast %13 : vector<8x1xf32> to vector<8x32xf32>
    %15 = arith.divf %11, %14 : vector<8x32xf32>
    %16 = arith.index_cast %arg0 : i32 to index
    %c0_8 = arith.constant 0 : index
    %17 = vector.load %arg3[%16, %c0_8] : memref<2x32xf32, #tpu.memory_space<vmem>>, vector<1x32xf32>
    %18 = vector.broadcast %17 : vector<1x32xf32> to vector<8x32xf32>
    %19 = arith.mulf %15, %18 : vector<8x32xf32>
    %20 = arith.addf %1, %19 : vector<8x32xf32>
    %cst_9 = arith.constant dense<0.000000e+00> : vector<8xf32>
    %21 = vector.multi_reduction <add>, %20, %cst_9 [1] : vector<8x32xf32> to vector<8xf32>
    %22 = vector.shape_cast %21 : vector<8xf32> to vector<8x1xf32>
    %cst_10 = arith.constant 3.200000e+01 : f32
    %23 = vector.broadcast %cst_10 : f32 to vector<8x1xf32>
    %24 = arith.divf %22, %23 : vector<8x1xf32>
    %25 = vector.broadcast %24 : vector<8x1xf32> to vector<8x32xf32>
    %26 = arith.subf %20, %25 : vector<8x32xf32>
    %27 = arith.mulf %26, %26 : vector<8x32xf32>
    %cst_11 = arith.constant dense<0.000000e+00> : vector<8xf32>
    %28 = vector.multi_reduction <add>, %27, %cst_11 [1] : vector<8x32xf32> to vector<8xf32>
    %29 = vector.shape_cast %28 : vector<8xf32> to vector<8x1xf32>
    %cst_12 = arith.constant 3.200000e+01 : f32
    %30 = vector.broadcast %cst_12 : f32 to vector<8x1xf32>
    %31 = arith.divf %29, %30 : vector<8x1xf32>
    %cst_13 = arith.constant 9.99999974E-6 : f32
    %32 = vector.broadcast %cst_13 : f32 to vector<8x1xf32>
    %33 = arith.addf %31, %32 : vector<8x1xf32>
    %34 = math.rsqrt %33 : vector<8x1xf32>
    %35 = vector.broadcast %34 : vector<8x1xf32> to vector<8x32xf32>
    %36 = arith.mulf %26, %35 : vector<8x32xf32>
    %c1 = arith.constant 1 : index
    %c0_14 = arith.constant 0 : index
    %37 = vector.load %arg5[%c1, %c0_14] : memref<3x32xf32, #tpu.memory_space<vmem>>, vector<1x32xf32>
    %38 = vector.broadcast %37 : vector<1x32xf32> to vector<8x32xf32>
    %39 = arith.mulf %36, %38 : vector<8x32xf32>
    %c2 = arith.constant 2 : index
    %c0_15 = arith.constant 0 : index
    %40 = vector.load %arg5[%c2, %c0_15] : memref<3x32xf32, #tpu.memory_space<vmem>>, vector<1x32xf32>
    %41 = vector.broadcast %40 : vector<1x32xf32> to vector<8x32xf32>
    %42 = arith.addf %39, %41 : vector<8x32xf32>
    %c0_16 = arith.constant 0 : index
    %c0_17 = arith.constant 0 : index
    %c0_18 = arith.constant 0 : index
    %43 = vector.load %arg6[%c0_16, %c0_17, %c0_18] : memref<1x8x32xf32, #tpu.memory_space<vmem>>, vector<1x8x32xf32>
    %44 = vector.shape_cast %43 : vector<1x8x32xf32> to vector<8x32xf32>
    %45 = vector.shape_cast %42 : vector<8x32xf32> to vector<1x8x32xf32>
    tpu.vector_store %arg6[%c0_16, %c0_17, %c0_18], %45 {strides = array<i32>} : memref<1x8x32xf32, #tpu.memory_space<vmem>>, vector<1x8x32xf32>,
    return
  }
  func.func @transform_0(%arg0: i32, %arg1: i32) -> (i32, i32, i32) {
    %c0_i32 = arith.constant 0 : i32
    %c0_i32_0 = arith.constant 0 : i32
    return %arg0, %arg1, %c0_i32 : i32, i32, i32
  }
  func.func @transform_1(%arg0: i32, %arg1: i32) -> (i32, i32) {
    %c0_i32 = arith.constant 0 : i32
    %c0_i32_0 = arith.constant 0 : i32
    %c0_i32_1 = arith.constant 0 : i32
    return %c0_i32, %c0_i32_0 : i32, i32
  }
  func.func @transform_2(%arg0: i32, %arg1: i32) -> (i32, i32) {
    %c0_i32 = arith.constant 0 : i32
    %c0_i32_0 = arith.constant 0 : i32
    %c0_i32_1 = arith.constant 0 : i32
    return %c0_i32, %c0_i32_0 : i32, i32
  }
  func.func @transform_3(%arg0: i32, %arg1: i32) -> (i32, i32) {
    %c0_i32 = arith.constant 0 : i32
    %c0_i32_0 = arith.constant 0 : i32
    %c0_i32_1 = arith.constant 0 : i32
    return %c0_i32, %c0_i32_0 : i32, i32
  }
  func.func @transform_4(%arg0: i32, %arg1: i32) -> (i32, i32, i32) {
    %c0_i32 = arith.constant 0 : i32
    %c0_i32_0 = arith.constant 0 : i32
    return %arg0, %arg1, %c0_i32 : i32, i32, i32
  }
}

</mosaic_0001>

<bundles_post_ra>
// kernel: tpu_custom_call.1
= control target key start
LH: loop header
LB: loop body
LE: loop exit
PB: predicated region body
PF: predicated region fallthrough
CT: control target
= control target key end

     0   :  { %9 = vsyncpa [#allocation3], 0  ;;  %s1023_s0 = inlined_call_operand.hbm [shape: f32[2,8,32], index: 0, kind: input, shape index: {}]   ;;  %s1024_s1 = inlined_call_operand.vmem [shape: f32[2,32], index: 1, kind: input, shape index: {}]   ;;  %s1025_s2 = inlined_call_operand.hbm [shape: f32[32,32], index: 2, kind: input, shape index: {}]   ;;  %s1026_s3 = inlined_call_operand.vmem [shape: f32[3,32], index: 3, kind: input, shape index: {}]   ;;  %s1027_s4 = inlined_call_operand.hbm [shape: f32[2,8,32], index: 4, kind: output, shape index: {}]  }
   0x1   :  { %11 = vsyncpa [#allocation3 + $0x1], 0 }
   0x2   :  { %12 = vsyncpa [#allocation6], 0 }
   0x3   :  { %13 = vsyncpa [#allocation4], 0 }
   0x4   :  { %15 = vsyncpa [#allocation4 + $0x1], 0  ;;  %s786_s15 = smov 0   ;;  %s788_s16 = smov 0  }
   0x5   :  { %s790_s17 = smov 0   ;;  %s792_s18 = smov 0  }
   0x6   :  { %s794_s19 = smov 0   ;;  %s796_s20 = smov 0  }
   0x7 LB: > { %s481_s21 = sadd.s32 4294967295, %s751_s20   ;;  %s482_s22 = sadd.s32 4294967294, %s751_s20   ;;  %s751_s20 = sphi %s796_s20, %s21_s20   ;;  %s747_s19 = sphi %s794_s19, %s1051_s19   ;;  %s743_s18 = sphi %s792_s18, %s1050_s18   ;;  %s739_s17 = sphi %s790_s17, %s1049_s17   ;;  %s735_s16 = sphi %s788_s16, %s1048_s16   ;;  %s731_s15 = sphi %s786_s15, %s1047_s15  }
   0x8   : > { %p55_p0 = scmp.ne.s32.totalorder %s735_s16, %s731_s15  ;;  %p820_p1 = scmp.eq.s32.totalorder %s481_s21, 0 }
   0x9   : > { %p824_p2 = scmp.eq.s32.totalorder %s481_s21, 1  ;;  %p150_p3 = scmp.eq.s32.totalorder %s482_s22, 1 }
   0xa   : > { %s1032_s23 = scalar_select %p820_p1, 1, 0 }
   0xb   : > { %s1033_s24 = scalar_select %p824_p2, 1, 0 }
   0xc   : > { %p830_p4 = por %p820_p1, %p55_p0  ;;  %p483_p5 = scmp.ge.s32.totalorder %s751_s20, 1 }
   0xd   : > { %p835_p6 = por %p150_p3, %p55_p0  ;;  %p157_p7 = scmp.lt.s32.totalorder %s751_s20, 3 }
   0xe   : > { %s1034_s25 = scalar_select %p830_p4, 1, 0 }
   0xf   : > { %s1035_s26 = scalar_select %p835_p6, 1, 0 }
  0x10   : > { %p840_p8 = pnand %p483_p5, %p157_p7  ;;  %s753_s28 = smov [#allocation5]  }
  0x11   : > { %s172_s29 = sshll.u32 %s753_s28, 4  ;;  %s33_s5 = sadd.s32 1, %s747_s19  ;;  %s173_s29 = int_to_ptr.vmem [resolvable:$true] %s172_s29 }
  0x12   : > { %s1036_s27 = scalar_select %p840_p8, 1, 0 }
  0x13   : > { %p531_p9 = pneg %p840_p8  ;;  %s607_s8 = scalar_lea.hbm %s1025_s2, 512 }
  0x14   : > { %p608_p12 = scmp.ne.s32.totalorder %s1025_s2, %s607_s8  ;;  %p614_p5 = scmp.lt.u32.totalorder %s607_s8, %s1025_s2 }
  0x15   : > { %p849_p11 = pnand %p531_p9, %p820_p1 }
  0x17   : > { %p609_p13 = pneg %p849_p11 }
  0x19   : > { %p610_p0 = pnand %p609_p13, %p608_p12 }
  0x1b   : > { %p611_p3 = pneg %p610_p0 }
  0x1d   : > { %p616_p7 = pnand %p614_p5, %p611_p3 }
  0x1f   : > { %619 = shalt.err (!%p616_p7)
}
  0x20   : > { %s620_s13 = scalar_lea.vmem %s173_s29, 512  ;;  %p628_p1 = scmp.lt.s32.totalorder %s173_s29, %s173_s29 }
  0x21   : > { %p621_p9 = scmp.ne.s32.totalorder %s173_s29, %s620_s13  ;;  %p629_p4 = scmp.lt.s32.totalorder %s620_s13, %s620_s13 }
  0x23   : > { %p623_p10 = pnand %p621_p9, %p609_p13  ;;  %p630_p8 = por %p629_p4, %p628_p1 }
  0x25   : > { %p624_p6 = pneg %p623_p10 }
  0x27   : > { %p631_p2 = pnand %p630_p8, %p624_p6 }
  0x29   : > { %634 = shalt.err (!%p631_p2)
}
  0x2a   : > { %s754_s14 = smov 128   ;;  %s755_s21 = smov 8  }
  0x2b   : > { %534 = dma.hbm_to_vmem [thread:$0]  (!%p849_p11), %s1025_s2, 512, %s173_s29, [#allocation6], %s754_s14, %s754_s14, %s755_s21  }
  0x2c   : > { %p35_p1 = scmp.ge.s32.totalorder %s33_s5, 2  ;;  %s42_s6 = sadd.s32 1, %s739_s17 }
  0x2d   : > { %p49_p2 = scmp.ne.s32.totalorder %s739_s17, %s735_s16  ;;  %p50_p4 = scmp.eq.s32.totalorder %s751_s20, 0 }
  0x2e   : > { %s1053_s5 = smov (%p35_p1, %s33_s5), 0  ;;  %p1039_p8 = scmp.ne.s32.totalorder %s1033_s24, 0 }
  0x2f   : > { %p876_p6 = por %p50_p4, %p49_p2  ;;  %s37_s30 = ssub.s32 %s747_s19, %s1053_s5 }
  0x30   : > { %p882_p10 = por %p1039_p8, %p49_p2  ;;  %p544_p12 = scmp.lt.s32.totalorder %s751_s20, 2 }
  0x31   : > { %p40_p11 = scmp.eq.s32.totalorder %s37_s30, 0  ;;  %s189_s29 = sand.u32 1, %s739_s17  }
  0x32   : > { %s486_s9 = sshll.u32 %s189_s29, 3  ;;  %s487_s11 = sshll.u32 %s747_s19, 7 }
  0x33   : > { %s891_s10 = scalar_select %p40_p11, %s739_s17, %s42_s6  }
  0x34   : > { %s897_s14 = scalar_lea.hbm %s1023_s0, %s487_s11  ;;  %s193_s24 = scalar_lea.vmem [#allocation2], %s486_s9 }
  0x35   : > { %s201_s21 = sshll.u32 %s193_s24, 4  ;;  %p903_p13 = pnand %p544_p12, %p876_p6  ;;  %s899_s21 = int_to_ptr.vmem [resolvable:$true] %s201_s21 }
  0x36   : > { %s190_s28 = scalar_lea.sflag [#allocation3], %s189_s29  ;;  %s635_s6 = scalar_lea.hbm %s897_s14, 128 }
  0x37   : > { %p636_p0 = scmp.ne.s32.totalorder %s897_s14, %s635_s6  ;;  %p637_p3 = pneg %p903_p13 }
  0x38   : > { %s640_s11 = scalar_lea.hbm %s1023_s0, 256  ;;  %p641_p9 = scmp.lt.u32.totalorder %s897_s14, %s1023_s0 }
  0x39   : > { %p638_p5 = pnand %p637_p3, %p636_p0  ;;  %p642_p1 = scmp.lt.u32.totalorder %s640_s11, %s635_s6 }
  0x3a   : > { %p644_p4 = scmp.lt.u32.totalorder %s635_s6, %s897_s14 }
  0x3b   : > { %p639_p7 = pneg %p638_p5  ;;  %p643_p2 = por %p642_p1, %p641_p9 }
  0x3d   : > { %p645_p6 = por %p644_p4, %p643_p2 }
  0x3f   : > { %p646_p8 = pnand %p645_p6, %p639_p7 }
  0x41   : > { %649 = shalt.err (!%p646_p8)
}
  0x42   : > { %s650_s29 = scalar_lea.vmem %s899_s21, 128  ;;  %s756_s13 = smov [#allocation2]  }
  0x43   : > { %p651_p12 = scmp.ne.s32.totalorder %s899_s21, %s650_s29  ;;  %s655_s24 = sshll.u32 %s756_s13, 4  ;;  %s656_s24 = int_to_ptr.vmem [resolvable:$false] %s655_s24 }
  0x44   : > { %s657_s30 = scalar_lea.vmem %s656_s24, 256  ;;  %p658_p5 = scmp.lt.s32.totalorder %s899_s21, %s656_s24 }
  0x45   : > { %p653_p11 = pnand %p651_p12, %p637_p3  ;;  %p659_p9 = scmp.lt.s32.totalorder %s657_s30, %s650_s29 }
  0x47   : > { %p654_p0 = pneg %p653_p11  ;;  %p660_p1 = por %p659_p9, %p658_p5 }
  0x49   : > { %p661_p2 = pnand %p660_p1, %p654_p0 }
  0x4b   : > { %664 = shalt.err (!%p661_p2)
}
  0x4c   : > { %538 = dma.hbm_to_vmem [thread:$0]  (!%p903_p13), %s897_s14, 128, %s899_s21, %s190_s28  }
  0x4d   : > { %p1042_p7 = scmp.ne.s32.totalorder %s1036_s27, 0 }
  0x4e   : > { %s935_s6 = sand.u32 (!%p1042_p7), 1, %s735_s16   ;;  %p1043_p3 = scmp.ne.s32.totalorder (!%p1042_p7), %s1034_s25, 0 }
  0x4f   : > { %210 = sbr.rel (%p1042_p7) target bundleno = 960 (0x3c0), region = 36  ;;  %s489_s9 = sshll.u32 (!%p1042_p7), %s935_s6, 3 }
  0x50   : > { %s213_s11 = scalar_lea.sflag (!%p1042_p7), [#allocation3], %s935_s6  ;;  %s216_s7 = scalar_lea.vmem (!%p1042_p7), [#allocation2], %s489_s9 }
  0x56   : > { %718 = dma.done.wait (%p1043_p3), %s213_s11, 128  }
  0x57   : > { %720 = vsyncadd (%p1043_p3), %s213_s11, 4294967168  ;;  %p1044_p13 = scmp.ne.s32.totalorder %s1032_s23, 0 }
  0x59   : > { %722 = dma.done.wait (%p1044_p13), [#allocation6], 512  }
  0x5a   : > { %724 = vsyncadd (%p1044_p13), [#allocation6], 4294966784  ;;  %v757_v0 = vmov 0.0|0.0   ;;  %vm758_vm0 = vmmov 0   ;;  %v759_v1 = vmov 0.0   ;;  %v246_v2 = vld [vmem:[#allocation5] sm:$0xff]  ;;  %s340_s21 = scalar_lea.vmem %s1024_s1, %s743_s18 }
  0x5b   : > { %517 = vmatprep.subr.bf16.mxu0 %v757_v0  ;;  %514 = vmatprep.mubr.msk.f32.mxu0 %vm758_vm0, %v759_v1  ;;  %v247_v3 = vld [vmem:[#allocation5 + $0x8] sm:$0xff]  ;;  %v248_v4 = vld [vmem:[#allocation5 + $0x10] sm:$0xff]  ;;  %v249_v6 = vld [vmem:[#allocation5 + $0x18] sm:$0xff]  ;;  %vm255_vm1 = vcmask 261120   ;;  %s498_s13 = sshll.u32 %s743_s18, 7  ;;  %s244_s24 = scalar_lea.vmem [#allocation7], %s489_s9 }
  0x5c   : > { %v518_v5 = vpack.c.bf16 %v247_v3, %v246_v2  ;;  %v521_v7 = vpack.c.bf16 %v249_v6, %v248_v4  ;;  %v245_v8 = vld [vmem:[%s216_s7] sm:$0xff]  ;;  %s390_s30 = sshll.u32 %s244_s24, 4  ;;  %s973_s23 = scalar_lea.hbm %s1027_s4, %s498_s13  ;;  %s975_s30 = int_to_ptr.vmem [resolvable:$true] %s390_s30 }
  0x5d   : > { %v492_v9 = vld [vmem:[%s1026_s3] ss:$0 sm:$0xff]  ;;  %v495_v35 = vld [vmem:[%s1026_s3 + $0x1] ss:$0 sm:$0xff]  ;;  %v496_v37 = vld [vmem:[%s1026_s3 + $0x2] ss:$0 sm:$0xff] }
  0x5e   : > { %519 = vmatpush3.bf16.msra.mxu0 %v518_v5  ;;  %v494_v21 = vld [vmem:[%s340_s21] ss:$0 sm:$0xff]  ;;  %s376_s25 = scalar_lea.sflag [#allocation4], %s935_s6  ;;  %s665_s27 = scalar_lea.vmem %s975_s30, 128 }
  0x5f   : > { %520 = vmatprep.subr.bf16.mxu0 %v757_v0  ;;  %p666_p4 = scmp.ne.s32.totalorder %s975_s30, %s665_s27  ;;  %s760_s18 = smov [#allocation7]  }
  0x60   : > { %s669_s9 = sshll.u32 %s760_s18, 4  ;;  %s670_s9 = int_to_ptr.vmem [resolvable:$false] %s669_s9 }
  0x61   : > { %p667_p6 = pnand %p666_p4, %p882_p10  ;;  %s671_s14 = scalar_lea.vmem %s670_s9, 256 }
  0x62   : > { %522 = vmatpush3.bf16.msra.mxu0 %v521_v7  ;;  %p672_p12 = scmp.lt.s32.totalorder %s975_s30, %s670_s9  ;;  %p673_p11 = scmp.lt.s32.totalorder %s671_s14, %s665_s27 }
  0x63   : > { %p668_p8 = pneg %p667_p6 }
  0x64   : > { %p674_p0 = por %p673_p11, %p672_p12 }
  0x65   : > { %515 = vmatmul.mubr.msk.f32.vlgmr.msra.gmra.mrb[0].mxu0 %vm255_vm1, %v245_v8 }
  0x66   : > { %p675_p5 = pnand %p674_p0, %p668_p8 }
 0x138   : > { %v325_v10 = vpop.f32.mrb[0].mxu0 }
 0x139   : > { %v326_v11 = vadd.f32 %v492_v9, %v325_v10  ;;  %v516_v12 = vpop.f32.mrb[1].mxu0 }
 0x13b   : > { %v329_v13 = vsel %vm255_vm1, %v326_v11, -inf }
 0x13c   : > { %330 = vmax.xlane.f32.xlu0 %v329_v13 }
 0x1c9   : > { %v331_v14 = vpop.xlane.xlu0 %330 }
 0x1ca   : > { %v332_v15 = vsub.f32 %v326_v11, %v331_v14 }
 0x1cc   : > { %v333_v16 = vmul.f32 1.442695, %v332_v15 }
 0x1ce   : > { %601 = vpow2.f32 %v333_v16 }
 0x1d8   : > { %v602_v17 = vpop.eup %601 }
 0x1d9   : > { %v335_v18 = vsel %vm255_vm1, %v602_v17, 0.0 }
 0x1da   : > { %336 = vadd.xlane.f32.xlu0 %v335_v18 }
 0x267   : > { %v337_v19 = vpop.xlane.xlu0 %336 }
 0x268   : > { %603 = vrcp.f32 %v337_v19 }
 0x272   : > { %v604_v20 = vpop.eup %603 }
 0x273   : > { %v339_v22 = vmul.f32 %v604_v20, %v602_v17 }
 0x275   : > { %v346_v23 = vmul.f32 %v494_v21, %v339_v22 }
 0x277   : > { %v347_v24 = vadd.f32 %v346_v23, %v245_v8 }
 0x279   : > { %v348_v25 = vsel %vm255_vm1, %v347_v24, 0.0 }
 0x27a   : > { %349 = vadd.xlane.f32.xlu1 %v348_v25 }
 0x307   : > { %v350_v26 = vpop.xlane.xlu1 %349 }
 0x308   : > { %v352_v27 = vmul.f32 0.03125, %v350_v26 }
 0x30a   : > { %v353_v28 = vsub.f32 %v347_v24, %v352_v27 }
 0x30c   : > { %v354_v29 = vmul.f32 %v353_v28, %v353_v28 }
 0x30e   : > { %v355_v30 = vsel %vm255_vm1, %v354_v29, 0.0 }
 0x30f   : > { %356 = vadd.xlane.f32.xlu1 %v355_v30 }
 0x39c   : > { %v357_v31 = vpop.xlane.xlu1 %356 }
 0x39d   : > { %v358_v32 = vmul.f32 0.03125, %v357_v31 }
 0x39f   : > { %v359_v33 = vadd.f32 1e-05, %v358_v32 }
 0x3a1   : > { %605 = vrsqrt.f32 %v359_v33 }
 0x3ab   : > { %v606_v34 = vpop.eup %605 }
 0x3ac   : > { %v361_v36 = vmul.f32 %v606_v34, %v353_v28 }
 0x3ae   : > { %v367_v38 = vmul.f32 %v495_v35, %v361_v36 }
 0x3b0   : > { %v373_v39 = vadd.f32 %v496_v37, %v367_v38 }
 0x3b2   : > { %374 = vst.msk [vmem:[%s244_s24] sm:$0xff] %vm255_vm1, %v373_v39 }
 0x3b3   : > { %678 = shalt.err (!%p675_p5)
}
 0x3b4   : > { %s679_s6 = scalar_lea.hbm %s973_s23, 128  ;;  %s683_s28 = scalar_lea.hbm %s1027_s4, 256 }
 0x3b5   : > { %p680_p9 = scmp.ne.s32.totalorder %s973_s23, %s679_s6  ;;  %p684_p7 = scmp.lt.u32.totalorder %s973_s23, %s1027_s4 }
 0x3b6   : > { %p685_p3 = scmp.lt.u32.totalorder %s683_s28, %s679_s6  ;;  %p687_p4 = scmp.lt.u32.totalorder %s679_s6, %s973_s23 }
 0x3b7   : > { %p681_p1 = pnand %p680_p9, %p882_p10 }
 0x3b8   : > { %p686_p13 = por %p685_p3, %p684_p7 }
 0x3b9   : > { %p682_p2 = pneg %p681_p1 }
 0x3ba   : > { %p688_p6 = por %p687_p4, %p686_p13 }
 0x3bc   : > { %p689_p8 = pnand %p688_p6, %p682_p2 }
 0x3be   : > { %692 = shalt.err (!%p689_p8)
}
 0x3bf   : > { %529 = dma.vmem_to_hbm [thread:$0]  (%p882_p10), %s975_s30, 128, %s973_s23, %s376_s25  }
 0x3c0 PF: > { %s402_s13 = sand.u32 1, %s731_s15   ;;  %p1045_p12 = scmp.ne.s32.totalorder %s1035_s26, 0 }
 0x3c1   : > { %p1046_p11 = scmp.ge.s32.totalorder %s751_s20, 2  ;;  %s403_s24 = scalar_lea.sflag [#allocation4], %s402_s13 }
 0x3c3   : > { %p540_p0 = pnand %p1046_p11, %p1045_p12 }
 0x3c5   : > { %726 = dma.done.wait (!%p540_p0), %s403_s24, 128  }
 0x3c6   : > { %728 = vsyncadd (!%p540_p0), %s403_s24, 4294967168  ;;  %s21_s20 = sadd.s32 1, %s751_s20   ;;  %s1047_s15 = smov %s735_s16 }
 0x3c7   : > { %p18_p5 = scmp.ge.s32.totalorder %s21_s20, 4   ;;  %s1048_s16 = smov %s739_s17 }
 0x3c8   : > { %s1049_s17 = smov %s891_s10  ;;  %s1050_s18 = smov %s747_s19 }
 0x3c9   : > { %s1051_s19 = smov %s1053_s5  ;;  %20 = sbr.rel (!%p18_p5) target bundleno = 7 (0x7), region = 86 }
 0x3d0   :  { %408 = vsyncpa [#allocation3], 1 }
 0x3d1   :  { %410 = vsyncpa [#allocation3 + $0x1], 1 }
 0x3d2   :  { %411 = vsyncpa [#allocation6], 1 }
 0x3d3   :  { %412 = vsyncpa [#allocation4], 1 }
 0x3d4   :  { %414 = vsyncpa [#allocation4 + $0x1], 1 }

</bundles_post_ra>
